<compile_context>
chip_gen: v6e
topology: v6e:2x2x1
jax: 0.10.0
libtpu: 0.0.40
codegen_flags: <defaults>
</compile_context>

<pallas_src>
import math

import jax
import jax.numpy as jnp
from jax.experimental import pallas as pl
from jax.experimental.pallas import tpu as pltpu


def _sum_channels_kernel(x_ref, o_ref, acc_ref):
    # x_ref:   (TB, TC, TL) input slab for this grid step
    # o_ref:   (TB, TL)     lane-dense output block (revisited across k)
    # acc_ref: (TB, TL)     f32 accumulator scratch (persists across k steps)
    kc = pl.program_id(2)

    @pl.when(kc == 0)
    def _init():
        acc_ref[...] = jnp.zeros_like(acc_ref)

    # Reduce this channel slab in f32 regardless of input dtype. The VPU adds
    # are free in this HBM-bandwidth-bound kernel and this avoids low-precision
    # accumulation for bf16/fp16 inputs with large C.
    acc_ref[...] += jnp.sum(x_ref[...].astype(jnp.float32), axis=1)

    @pl.when(kc == pl.num_programs(2) - 1)
    def _finalize():
        o_ref[...] = acc_ref[...].astype(o_ref.dtype)


def _divisors_desc(n):
    return [d for d in range(n, 0, -1) if n % d == 0]


def _choose_tiles(B, C, L, itemsize):
    """Pick (TB, TC, TL) tiles that divide (B, C, L) and respect TPU tiling."""
    # --- Lane tile (last dim): full extent when modest, else the largest
    # 128-multiple divisor up to a cap (>=512 lanes approaches HBM roofline).
    LANE_CAP = 8192
    if L % 128 == 0 and L > LANE_CAP:
        TL = 128
        for cand in range(LANE_CAP, 127, -128):
            if L % cand == 0:
                TL = cand
                break
    else:
        TL = L  # full-extent block dim is always legal

    # --- Channel tile: keep full C unless one (1, C, TL) slab is too large to
    # double-buffer comfortably (matters most on v7x's 64 MiB VMEM); then split
    # C across the 'arbitrary' grid axis with the f32 accumulator.
    C_SLAB_BUDGET = 8 * 1024 * 1024
    TC = C
    if C * TL * itemsize > C_SLAB_BUDGET:
        for cand in _divisors_desc(C):
            if cand != C and cand % 8 != 0:
                continue  # (8,128) rule on the input block's 2nd-to-last dim
            if cand * TL * itemsize <= C_SLAB_BUDGET:
                TC = cand
                break

    # --- Batch tile: largest divisor of B whose double-buffered working set
    # (2 * (input tile + output tile) + f32 accumulator) fits a conservative
    # cross-generation VMEM target.
    VMEM_TARGET = 24 * 1024 * 1024
    TB = 1
    for cand in _divisors_desc(B):
        if cand != B and cand % 8 != 0:
            continue  # (8,128) rule on the output block's 2nd-to-last dim
        work = 2 * (cand * TC * TL + cand * TL) * itemsize + cand * TL * 4
        if work <= VMEM_TARGET:
            TB = cand
            break
    return TB, TC, TL


def calc_output(x: jax.Array, *, tiles=None) -> jax.Array:
    """Sum over axis 1 of x (torch.sum(x, 1) semantics) via a Pallas kernel."""
    if x.ndim < 2:
        raise ValueError("calc_output expects an input with at least 2 dims")

    B, C = int(x.shape[0]), int(x.shape[1])
    trailing = tuple(int(d) for d in x.shape[2:])
    L = math.prod(trailing) if trailing else 1
    itemsize = x.dtype.itemsize

    # Lane-dense layout: flatten all spatial dims into a single trailing axis.
    x3 = x.reshape(B, C, L)

    if tiles is None:
        TB, TC, TL = _choose_tiles(B, C, L, itemsize)
    else:
        TB, TC, TL = tiles
        assert B % TB == 0 and C % TC == 0 and L % TL == 0

    grid = (B // TB, L // TL, C // TC)

    # Raise scoped-VMEM limit from the actual working set, with headroom,
    # clamped to a value that is safe on every generation (<= 48 MiB).
    work = 2 * (TB * TC * TL + TB * TL) * itemsize + TB * TL * 4
    vmem_limit = int(min(48 * 1024 * 1024, max(16 * 1024 * 1024, 2 * work)))

    out = pl.pallas_call(
        _sum_channels_kernel,
        out_shape=jax.ShapeDtypeStruct((B, L), x.dtype),
        grid_spec=pltpu.PrefetchScalarGridSpec(
            num_scalar_prefetch=0,
            grid=grid,
            in_specs=[pl.BlockSpec((TB, TC, TL), lambda b, l, k: (b, k, l))],
            out_specs=pl.BlockSpec((TB, TL), lambda b, l, k: (b, l)),
            scratch_shapes=[pltpu.VMEM((TB, TL), jnp.float32)],
        ),
        compiler_params=pltpu.CompilerParams(
            dimension_semantics=("parallel", "parallel", "arbitrary"),
            vmem_limit_bytes=vmem_limit,
        ),
    )(x3)

    return out.reshape((B,) + trailing)


if __name__ == "__main__":
    key = jax.random.PRNGKey(0)
    k1, k2 = jax.random.split(key)

    # Case 1: the module's nominal small NCHW input (auto-chosen tiles).
    x = jax.random.normal(k1, (2, 4, 16, 16), dtype=jnp.float32)
    out = jax.block_until_ready(calc_output(x))
    ref = jnp.sum(x, axis=1)
    assert out.shape == ref.shape == (2, 16, 16)
    assert jnp.allclose(out, ref, atol=1e-5, rtol=1e-5)

    # Case 2: force a multi-step grid (batch, lane and channel tiling) so the
    # 'arbitrary' reduction axis + f32 accumulator path is exercised on-device.
    x2 = jax.random.normal(k2, (16, 16, 8, 32), dtype=jnp.float32)
    out2 = jax.block_until_ready(calc_output(x2, tiles=(8, 8, 128)))
    ref2 = jnp.sum(x2, axis=1)
    assert out2.shape == ref2.shape == (16, 8, 32)
    assert jnp.allclose(out2, ref2, atol=1e-4, rtol=1e-4)

    print("KERNEL_OK")
</pallas_src>

<mosaic_0001>
module attributes {stable_mosaic.version = 11 : i64} {
  func.func @_sum_channels_kernel(%arg0: i32, %arg1: i32, %arg2: i32, %arg3: memref<2x4x256xf32, #tpu.memory_space<vmem>>, %arg4: memref<2x256xf32, #tpu.memory_space<vmem>>, %arg5: memref<2x256xf32, #tpu.memory_space<vmem>>) attributes {dimension_semantics = [#tpu.dimension_semantics<parallel>, #tpu.dimension_semantics<parallel>, #tpu.dimension_semantics<arbitrary>], iteration_bounds = array<i64: 1, 1, 1>, scalar_prefetch = 0 : i64, scratch_operands = 1 : i64, tpu.core_type = #tpu.core_type<tc>, window_params = [{transform_indices = @transform_0, window_bounds = array<i64: 2, 4, 256>}, {transform_indices = @transform_1, window_bounds = array<i64: 2, 256>}]} {
    %c0_i32 = arith.constant 0 : i32
    %0 = arith.cmpi eq, %arg2, %c0_i32 : i32
    %1 = arith.extui %0 : i1 to i32
    %c0_i32_0 = arith.constant 0 : i32
    %2 = arith.cmpi ne, %1, %c0_i32_0 : i32
    scf.if %2 {
      %cst_9 = arith.constant 0.000000e+00 : f32
      %11 = vector.broadcast %cst_9 : f32 to vector<2x256xf32>
      %c0_10 = arith.constant 0 : index
      %c0_11 = arith.constant 0 : index
      %12 = vector.load %arg5[%c0_10, %c0_11] : memref<2x256xf32, #tpu.memory_space<vmem>>, vector<2x256xf32>
      tpu.vector_store %arg5[%c0_10, %c0_11], %11 {strides = array<i32>} : memref<2x256xf32, #tpu.memory_space<vmem>>, vector<2x256xf32>,
    } else {
    }
    %c0 = arith.constant 0 : index
    %c0_1 = arith.constant 0 : index
    %3 = vector.load %arg5[%c0, %c0_1] : memref<2x256xf32, #tpu.memory_space<vmem>>, vector<2x256xf32>
    %c0_2 = arith.constant 0 : index
    %c0_3 = arith.constant 0 : index
    %c0_4 = arith.constant 0 : index
    %4 = vector.load %arg3[%c0_2, %c0_3, %c0_4] : memref<2x4x256xf32, #tpu.memory_space<vmem>>, vector<2x4x256xf32>
    %cst = arith.constant dense<0.000000e+00> : vector<2x256xf32>
    %5 = vector.multi_reduction <add>, %4, %cst [1] : vector<2x4x256xf32> to vector<2x256xf32>
    %6 = arith.addf %3, %5 : vector<2x256xf32>
    %c0_5 = arith.constant 0 : index
    %c0_6 = arith.constant 0 : index
    %7 = vector.load %arg5[%c0_5, %c0_6] : memref<2x256xf32, #tpu.memory_space<vmem>>, vector<2x256xf32>
    tpu.vector_store %arg5[%c0_5, %c0_6], %6 {strides = array<i32>} : memref<2x256xf32, #tpu.memory_space<vmem>>, vector<2x256xf32>,
    %c0_i32_7 = arith.constant 0 : i32
    %8 = arith.cmpi eq, %arg2, %c0_i32_7 : i32
    %9 = arith.extui %8 : i1 to i32
    %c0_i32_8 = arith.constant 0 : i32
    %10 = arith.cmpi ne, %9, %c0_i32_8 : i32
    scf.if %10 {
      %c0_9 = arith.constant 0 : index
      %c0_10 = arith.constant 0 : index
      %11 = vector.load %arg5[%c0_9, %c0_10] : memref<2x256xf32, #tpu.memory_space<vmem>>, vector<2x256xf32>
      %c0_11 = arith.constant 0 : index
      %c0_12 = arith.constant 0 : index
      %12 = vector.load %arg4[%c0_11, %c0_12] : memref<2x256xf32, #tpu.memory_space<vmem>>, vector<2x256xf32>
      tpu.vector_store %arg4[%c0_11, %c0_12], %11 {strides = array<i32>} : memref<2x256xf32, #tpu.memory_space<vmem>>, vector<2x256xf32>,
    } else {
    }
    return
  }
  func.func @transform_0(%arg0: i32, %arg1: i32, %arg2: i32) -> (i32, i32, i32) {
    %c0_i32 = arith.constant 0 : i32
    return %arg0, %arg2, %arg1 : i32, i32, i32
  }
  func.func @transform_1(%arg0: i32, %arg1: i32, %arg2: i32) -> (i32, i32) {
    %c0_i32 = arith.constant 0 : i32
    return %arg0, %arg1 : i32, i32
  }
}

</mosaic_0001>

<bundles_post_ra>
// kernel: tpu_custom_call.1
= control target key start
LH: loop header
LB: loop body
LE: loop exit
PB: predicated region body
PF: predicated region fallthrough
CT: control target
= control target key end

     0   :  { %6 = vsyncpa [#allocation4], 0  ;;  %s196_s0 = inlined_call_operand.hbm [shape: f32[2,4,256], index: 0, kind: input, shape index: {}]   ;;  %s197_s1 = inlined_call_operand.hbm [shape: f32[2,256], index: 1, kind: output, shape index: {}]  }
   0x1   :  { %7 = vsyncpa [#allocation5], 0  ;;  %s174_s6 = smov [#allocation3]  }
   0x2   :  { %s13_s7 = sshll.u32 %s174_s6, 4  ;;  %s14_s7 = int_to_ptr.vmem [resolvable:$true] %s13_s7 }
   0x3   :  { %s138_s8 = scalar_lea.vmem %s14_s7, 256  ;;  %p143_p1 = scmp.lt.s32.totalorder %s14_s7, %s14_s7 }
   0x4   :  { %p139_p0 = scmp.ne.s32.totalorder %s14_s7, %s138_s8  ;;  %p144_p2 = scmp.lt.s32.totalorder %s138_s8, %s138_s8 }
   0x6   :  { %p145_p3 = por %p144_p2, %p143_p1 }
   0x8   :  { %p146_p4 = pnand %p145_p3, %p139_p0 }
   0xa   :  { %149 = shalt.err (!%p146_p4)
}
   0xb   :  { %s175_s9 = smov 128   ;;  %s176_s10 = smov 8  }
   0xc   :  { %19 = dma.hbm_to_vmem [thread:$0]  %s196_s0, 256, %s14_s7, [#allocation4], %s175_s9, %s175_s9, %s176_s10  }
   0xd   :  { %170 = dma.done.wait [#allocation4], 256  }
   0xe   :  { %171 = vsyncadd [#allocation4], 4294967040  ;;  %v177_v0 = vmov 0.0   ;;  %vm37_vm0 = vcmask 1043456   ;;  %v29_v1 = vld [vmem:[#allocation3] sm:$0xff]  ;;  %v30_v2 = vld [vmem:[#allocation3 + $0x8] sm:$0xff]  ;;  %v74_v17 = vlaneseq }
   0xf   :  { %27 = vst [vmem:[#allocation2] sm:$0xf] %v177_v0  ;;  %v33_v3 = vcombine.high %v29_v1, %v29_v1  ;;  %v34_v4 = vcombine.high %v30_v2, %v30_v2  ;;  %v38_v5 = vsel %vm37_vm0, %v29_v1, 0.0  ;;  %v52_v6 = vsel %vm37_vm0, %v30_v2, 0.0  ;;  %s179_s0 = smov [#allocation6]  }
  0x10   :  { %v39_v7 = vrot.slane %v38_v5, 4  ;;  %v53_v8 = vrot.slane %v52_v6, 4  ;;  %v178_v15 = vmov 1983009808   ;;  %v75_v27 = vshrl.u32 %v74_v17, 7  ;;  %s113_s13 = sshll.u32 %s179_s0, 4  ;;  %s114_s13 = int_to_ptr.vmem [resolvable:$true] %s113_s13 }
  0x11   :  { %v45_v9 = vsel %vm37_vm0, %v33_v3, 0.0  ;;  %v59_v10 = vsel %vm37_vm0, %v34_v4, 0.0  ;;  %v72_v16 = vunpack.c.l.s4 %v178_v15  ;;  %vm91_vm1 = vcmask 1041409   ;;  %s150_s14 = scalar_lea.vmem %s114_s13, 64  ;;  %p155_p6 = scmp.lt.s32.totalorder %s114_s13, %s114_s13 }
  0x12   :  { %v40_v11 = vadd.f32 %v39_v7, %v38_v5  ;;  %v46_v12 = vrot.slane %v45_v9, 4  ;;  %v54_v13 = vadd.f32 %v53_v8, %v52_v6  ;;  %v60_v14 = vrot.slane %v59_v10, 4  ;;  %p151_p5 = scmp.ne.s32.totalorder %s114_s13, %s150_s14  ;;  %p156_p7 = scmp.lt.s32.totalorder %s150_s14, %s150_s14 }
  0x13   :  { %v73_v26 = vunpack.c.0.s8 %v72_v16  ;;  %vm93_vm2 = vcmask 1043459   ;;  %vm95_vm3 = vcmask 1045509   ;;  %vm97_vm4 = vcmask 1047559  }
  0x14   :  { %v41_v18 = vrot.slane %v40_v11, 2  ;;  %v47_v19 = vadd.f32 %v46_v12, %v45_v9  ;;  %v55_v20 = vrot.slane %v54_v13, 2  ;;  %v61_v21 = vadd.f32 %v60_v14, %v59_v10  ;;  %p157_p8 = por %p156_p7, %p155_p6 }
  0x15   :  { %v76_v38 = vsub.s32 %v73_v26, %v75_v27 }
  0x16   :  { %v42_v22 = vadd.f32 %v41_v18, %v40_v11  ;;  %v48_v23 = vrot.slane %v47_v19, 2  ;;  %v56_v24 = vadd.f32 %v55_v20, %v54_v13  ;;  %v62_v25 = vrot.slane %v61_v21, 2  ;;  %v28_v45 = vld [vmem:[#allocation2] sm:$0xf]  ;;  %p158_p9 = pnand %p157_p8, %p151_p5 }
  0x18   :  { %v43_v28 = vrot.slane %v42_v22, 1  ;;  %v49_v29 = vadd.f32 %v48_v23, %v47_v19  ;;  %v57_v30 = vrot.slane %v56_v24, 1  ;;  %v63_v31 = vadd.f32 %v62_v25, %v61_v21 }
  0x1a   :  { %v44_v32 = vadd.f32 %v43_v28, %v42_v22  ;;  %v50_v33 = vrot.slane %v49_v29, 1  ;;  %v58_v34 = vadd.f32 %v57_v30, %v56_v24  ;;  %v64_v35 = vrot.slane %v63_v31, 1 }
  0x1c   :  { %v51_v36 = vadd.f32 %v50_v33, %v49_v29  ;;  %v65_v37 = vadd.f32 %v64_v35, %v63_v31 }
  0x1e   :  { %v70_v39 = vcombine.low %v44_v32, %v51_v36  ;;  %v78_v40 = vcombine.low %v58_v34, %v65_v37 }
  0x20   :  { %v77_v41 = vrot.slane %v70_v39, %v76_v38  ;;  %v85_v42 = vrot.slane %v78_v40, %v76_v38 }
  0x22   :  { %v90_v43 = vrot.slane %v85_v42, 7 }
  0x24   :  { %v92_v44 = vsel %vm91_vm1, %v90_v43, %v77_v41 }
  0x25   :  { %v94_v46 = vsel %vm93_vm2, %v90_v43, %v92_v44 }
  0x26   :  { %v96_v47 = vsel %vm95_vm3, %v90_v43, %v94_v46 }
  0x27   :  { %v98_v48 = vsel %vm97_vm4, %v90_v43, %v96_v47 }
  0x28   :  { %v100_v49 = vadd.f32 %v98_v48, %v28_v45 }
  0x2a   :  { %101 = vst [vmem:[#allocation2] sm:$0xf] %v100_v49 }
  0x31   :  { %v105_v50 = vld [vmem:[#allocation2] sm:$0xf] }
  0x32   :  { %106 = vst [vmem:[#allocation6] sm:$0xf] %v105_v50 }
  0x33   :  { %161 = shalt.err (!%p158_p9)
}
  0x34   :  { %116 = dma.vmem_to_hbm [thread:$0]  %s114_s13, 64, %s197_s1, [#allocation5]  }
  0x35   :  { %172 = dma.done.wait [#allocation5], 64  }
  0x36   :  { %173 = vsyncadd [#allocation5], 4294967232 }
  0x37   :  { %120 = vsyncpa [#allocation4], 1 }
  0x38   :  { %121 = vsyncpa [#allocation5], 1 }

</bundles_post_ra>
